<compile_context>
chip_gen: v6e
topology: v6e:2x2x1
jax: 0.10.0
libtpu: 0.0.40
codegen_flags: <defaults>
</compile_context>

<pallas_src>
import jax
import jax.numpy as jnp
from jax.experimental import pallas as pl
from jax.experimental.pallas import tpu as pltpu


def encoder_kernel(x_ref, w1_ref, b1_ref, w2_ref, b2_ref, w3_ref, b3_ref, o_ref):
    # x_ref: (input_dim, tile_m) -- batch on lanes. Weights: (out, in). Biases: (out, 1).
    x = x_ref[...]
    h1 = jnp.dot(w1_ref[...], x, preferred_element_type=jnp.float32) + b1_ref[...]
    h1 = jnp.maximum(h1, 0.0)                                   # (8, tile_m), lane-dense
    h2 = jnp.dot(w2_ref[...], h1, preferred_element_type=jnp.float32) + b2_ref[...]
    h2 = jnp.maximum(h2, 0.0)                                   # (4, tile_m), lane-dense
    z = jnp.dot(w3_ref[...], h2, preferred_element_type=jnp.float32) + b3_ref[...]
    o_ref[...] = z.astype(o_ref.dtype)                          # (enc_dim, tile_m), lane-dense store


def autoencoder_forward(x, params, *, tile_m=None):
    """Runs the encoder path of the Autoencoder via a single fused Pallas TPU kernel.

    x: (batch, input_dim). params: (w1, b1, w2, b2, w3, b3) with weights in
    PyTorch (out_features, in_features) layout and biases of shape (out, 1).
    Returns (batch, encoding_dim).
    """
    w1, b1, w2, b2, w3, b3 = params
    n, input_dim = x.shape
    enc_dim = w3.shape[0]

    if tile_m is None:
        # Lane-dense batch tiles (multiple of 128); cap at 1024 so large batches
        # split into multiple "parallel" grid steps (v7x megacore: 2 TCs).
        tile_m = max(128, min(1024, 128 * pl.cdiv(n, 128)))

    n_pad = pl.cdiv(n, tile_m) * tile_m
    grid = (n_pad // tile_m,)

    # Transpose so batch is the lane (last) axis; pad batch to a tile multiple.
    xt = x.T
    if n_pad != n:
        xt = jnp.pad(xt, ((0, 0), (0, n_pad - n)))

    # Tiny weights/biases: fully resident, constant index_maps (no re-DMA across steps).
    full = lambda arr: pl.BlockSpec(arr.shape, lambda i: (0,) * arr.ndim)

    out_t = pl.pallas_call(
        encoder_kernel,
        out_shape=jax.ShapeDtypeStruct((enc_dim, n_pad), x.dtype),
        grid_spec=pltpu.PrefetchScalarGridSpec(
            num_scalar_prefetch=0,
            grid=grid,
            in_specs=[
                pl.BlockSpec((input_dim, tile_m), lambda i: (0, i)),  # x^T tile over batch
                full(w1), full(b1), full(w2), full(b2), full(w3), full(b3),
            ],
            out_specs=pl.BlockSpec((enc_dim, tile_m), lambda i: (0, i)),
        ),
        compiler_params=pltpu.CompilerParams(
            dimension_semantics=("parallel",),  # batch axis shards across TCs on v7x
        ),
    )(xt, w1, b1, w2, b2, w3, b3)

    return out_t[:, :n].T


def init_params(key, input_dim, encoding_dim, dtype=jnp.float32):
    """Deterministic init mimicking PyTorch nn.Linear default (uniform +/- 1/sqrt(fan_in)).

    Weights are stored in PyTorch layout (out_features, in_features).
    Biases are stored as (out_features, 1) for lane-broadcast inside the kernel.
    """
    dims = [(input_dim, 8), (8, 4), (4, encoding_dim)]
    params = []
    for (fan_in, fan_out) in dims:
        key, kw, kb = jax.random.split(key, 3)
        bound = 1.0 / jnp.sqrt(float(fan_in))
        w = jax.random.uniform(kw, (fan_out, fan_in), dtype, -bound, bound)
        b = jax.random.uniform(kb, (fan_out, 1), dtype, -bound, bound)
        params.extend([w, b])
    return tuple(params)


def reference_forward(x, params):
    w1, b1, w2, b2, w3, b3 = params
    h1 = jnp.maximum(x @ w1.T + b1.T, 0.0)
    h2 = jnp.maximum(h1 @ w2.T + b2.T, 0.0)
    return h2 @ w3.T + b3.T


if __name__ == "__main__":
    key = jax.random.PRNGKey(0)
    batch, input_dim, encoding_dim = 8, 16, 4

    k_x, k_p = jax.random.split(key)
    x = jax.random.normal(k_x, (batch, input_dim), jnp.float32)
    params = init_params(k_p, input_dim, encoding_dim)

    out = autoencoder_forward(x, params)
    out = jax.block_until_ready(out)

    ref = reference_forward(x, params)
    assert out.shape == (batch, encoding_dim)
    assert jnp.allclose(out, ref, atol=1e-5, rtol=1e-5), "mismatch vs reference"

    print("KERNEL_OK")
</pallas_src>

<mosaic_0001>
module attributes {stable_mosaic.version = 11 : i64} {
  func.func @encoder_kernel(%arg0: i32, %arg1: memref<16x128xf32, #tpu.memory_space<vmem>>, %arg2: memref<8x16xf32, #tpu.memory_space<vmem>>, %arg3: memref<8x1xf32, #tpu.memory_space<vmem>>, %arg4: memref<4x8xf32, #tpu.memory_space<vmem>>, %arg5: memref<4x1xf32, #tpu.memory_space<vmem>>, %arg6: memref<4x4xf32, #tpu.memory_space<vmem>>, %arg7: memref<4x1xf32, #tpu.memory_space<vmem>>, %arg8: memref<4x128xf32, #tpu.memory_space<vmem>>) attributes {dimension_semantics = [#tpu.dimension_semantics<parallel>], iteration_bounds = array<i64: 1>, scalar_prefetch = 0 : i64, scratch_operands = 0 : i64, tpu.core_type = #tpu.core_type<tc>, window_params = [{transform_indices = @transform_0, window_bounds = array<i64: 16, 128>}, {pipeline_mode = #tpu.pipeline_mode<synchronous>, transform_indices = @transform_1, window_bounds = array<i64: 8, 16>}, {pipeline_mode = #tpu.pipeline_mode<synchronous>, transform_indices = @transform_2, window_bounds = array<i64: 8, 1>}, {pipeline_mode = #tpu.pipeline_mode<synchronous>, transform_indices = @transform_3, window_bounds = array<i64: 4, 8>}, {pipeline_mode = #tpu.pipeline_mode<synchronous>, transform_indices = @transform_4, window_bounds = array<i64: 4, 1>}, {pipeline_mode = #tpu.pipeline_mode<synchronous>, transform_indices = @transform_5, window_bounds = array<i64: 4, 4>}, {pipeline_mode = #tpu.pipeline_mode<synchronous>, transform_indices = @transform_6, window_bounds = array<i64: 4, 1>}, {transform_indices = @transform_7, window_bounds = array<i64: 4, 128>}]} {
    %c0 = arith.constant 0 : index
    %c0_0 = arith.constant 0 : index
    %0 = vector.load %arg1[%c0, %c0_0] : memref<16x128xf32, #tpu.memory_space<vmem>>, vector<16x128xf32>
    %c0_1 = arith.constant 0 : index
    %c0_2 = arith.constant 0 : index
    %1 = vector.load %arg2[%c0_1, %c0_2] : memref<8x16xf32, #tpu.memory_space<vmem>>, vector<8x16xf32>
    %cst = arith.constant dense<0.000000e+00> : vector<8x128xf32>
    %2 = tpu.matmul %1, %0, %cst {dimension_numbers = #tpu.dot_dimension_numbers<[1], [0], [0], [1], [0, 0, 1, 1], [], []>} : vector<8x16xf32>, vector<16x128xf32>, vector<8x128xf32> -> vector<8x128xf32>
    %c0_3 = arith.constant 0 : index
    %c0_4 = arith.constant 0 : index
    %3 = vector.load %arg3[%c0_3, %c0_4] : memref<8x1xf32, #tpu.memory_space<vmem>>, vector<8x1xf32>
    %4 = vector.broadcast %3 : vector<8x1xf32> to vector<8x128xf32>
    %5 = arith.addf %2, %4 : vector<8x128xf32>
    %cst_5 = arith.constant 0.000000e+00 : f32
    %6 = vector.broadcast %cst_5 : f32 to vector<8x128xf32>
    %7 = arith.maximumf %5, %6 : vector<8x128xf32>
    %c0_6 = arith.constant 0 : index
    %c0_7 = arith.constant 0 : index
    %8 = vector.load %arg4[%c0_6, %c0_7] : memref<4x8xf32, #tpu.memory_space<vmem>>, vector<4x8xf32>
    %cst_8 = arith.constant dense<0.000000e+00> : vector<4x128xf32>
    %9 = tpu.matmul %8, %7, %cst_8 {dimension_numbers = #tpu.dot_dimension_numbers<[1], [0], [0], [1], [0, 0, 1, 1], [], []>} : vector<4x8xf32>, vector<8x128xf32>, vector<4x128xf32> -> vector<4x128xf32>
    %c0_9 = arith.constant 0 : index
    %c0_10 = arith.constant 0 : index
    %10 = vector.load %arg5[%c0_9, %c0_10] : memref<4x1xf32, #tpu.memory_space<vmem>>, vector<4x1xf32>
    %11 = vector.broadcast %10 : vector<4x1xf32> to vector<4x128xf32>
    %12 = arith.addf %9, %11 : vector<4x128xf32>
    %cst_11 = arith.constant 0.000000e+00 : f32
    %13 = vector.broadcast %cst_11 : f32 to vector<4x128xf32>
    %14 = arith.maximumf %12, %13 : vector<4x128xf32>
    %c0_12 = arith.constant 0 : index
    %c0_13 = arith.constant 0 : index
    %15 = vector.load %arg6[%c0_12, %c0_13] : memref<4x4xf32, #tpu.memory_space<vmem>>, vector<4x4xf32>
    %cst_14 = arith.constant dense<0.000000e+00> : vector<4x128xf32>
    %16 = tpu.matmul %15, %14, %cst_14 {dimension_numbers = #tpu.dot_dimension_numbers<[1], [0], [0], [1], [0, 0, 1, 1], [], []>} : vector<4x4xf32>, vector<4x128xf32>, vector<4x128xf32> -> vector<4x128xf32>
    %c0_15 = arith.constant 0 : index
    %c0_16 = arith.constant 0 : index
    %17 = vector.load %arg7[%c0_15, %c0_16] : memref<4x1xf32, #tpu.memory_space<vmem>>, vector<4x1xf32>
    %18 = vector.broadcast %17 : vector<4x1xf32> to vector<4x128xf32>
    %19 = arith.addf %16, %18 : vector<4x128xf32>
    %c0_17 = arith.constant 0 : index
    %c0_18 = arith.constant 0 : index
    %20 = vector.load %arg8[%c0_17, %c0_18] : memref<4x128xf32, #tpu.memory_space<vmem>>, vector<4x128xf32>
    tpu.vector_store %arg8[%c0_17, %c0_18], %19 {strides = array<i32>} : memref<4x128xf32, #tpu.memory_space<vmem>>, vector<4x128xf32>,
    return
  }
  func.func @transform_0(%arg0: i32) -> (i32, i32) {
    %c0_i32 = arith.constant 0 : i32
    %c0_i32_0 = arith.constant 0 : i32
    return %c0_i32, %arg0 : i32, i32
  }
  func.func @transform_1(%arg0: i32) -> (i32, i32) {
    %c0_i32 = arith.constant 0 : i32
    %c0_i32_0 = arith.constant 0 : i32
    %c0_i32_1 = arith.constant 0 : i32
    return %c0_i32, %c0_i32_0 : i32, i32
  }
  func.func @transform_2(%arg0: i32) -> (i32, i32) {
    %c0_i32 = arith.constant 0 : i32
    %c0_i32_0 = arith.constant 0 : i32
    %c0_i32_1 = arith.constant 0 : i32
    return %c0_i32, %c0_i32_0 : i32, i32
  }
  func.func @transform_3(%arg0: i32) -> (i32, i32) {
    %c0_i32 = arith.constant 0 : i32
    %c0_i32_0 = arith.constant 0 : i32
    %c0_i32_1 = arith.constant 0 : i32
    return %c0_i32, %c0_i32_0 : i32, i32
  }
  func.func @transform_4(%arg0: i32) -> (i32, i32) {
    %c0_i32 = arith.constant 0 : i32
    %c0_i32_0 = arith.constant 0 : i32
    %c0_i32_1 = arith.constant 0 : i32
    return %c0_i32, %c0_i32_0 : i32, i32
  }
  func.func @transform_5(%arg0: i32) -> (i32, i32) {
    %c0_i32 = arith.constant 0 : i32
    %c0_i32_0 = arith.constant 0 : i32
    %c0_i32_1 = arith.constant 0 : i32
    return %c0_i32, %c0_i32_0 : i32, i32
  }
  func.func @transform_6(%arg0: i32) -> (i32, i32) {
    %c0_i32 = arith.constant 0 : i32
    %c0_i32_0 = arith.constant 0 : i32
    %c0_i32_1 = arith.constant 0 : i32
    return %c0_i32, %c0_i32_0 : i32, i32
  }
  func.func @transform_7(%arg0: i32) -> (i32, i32) {
    %c0_i32 = arith.constant 0 : i32
    %c0_i32_0 = arith.constant 0 : i32
    return %c0_i32, %arg0 : i32, i32
  }
}

</mosaic_0001>

<bundles_post_ra>
// kernel: tpu_custom_call.1
= control target key start
LH: loop header
LB: loop body
LE: loop exit
PB: predicated region body
PF: predicated region fallthrough
CT: control target
= control target key end

     0   :  { %12 = vsyncpa [#allocation3], 0  ;;  %s460_s0 = inlined_call_operand.vmem [shape: f32[16,128], index: 0, kind: input, shape index: {}]   ;;  %s461_s1 = inlined_call_operand.hbm [shape: f32[8,16], index: 1, kind: input, shape index: {}]   ;;  %s462_s2 = inlined_call_operand.vmem [shape: f32[8,1], index: 2, kind: input, shape index: {}]   ;;  %s463_s3 = inlined_call_operand.vmem [shape: f32[4,8], index: 3, kind: input, shape index: {}]   ;;  %s464_s4 = inlined_call_operand.vmem [shape: f32[4,1], index: 4, kind: input, shape index: {}]   ;;  %s465_s5 = inlined_call_operand.vmem [shape: f32[4,4], index: 5, kind: input, shape index: {}]   ;;  %s466_s6 = inlined_call_operand.vmem [shape: f32[4,1], index: 6, kind: input, shape index: {}]   ;;  %s467_s7 = inlined_call_operand.hbm [shape: f32[4,128], index: 7, kind: output, shape index: {}]  }
   0x1   :  { %13 = vsyncpa [#allocation4], 0  ;;  %s385_s24 = smov [#allocation2]  }
   0x2   :  { %s22_s25 = sshll.u32 %s385_s24, 4  ;;  %s23_s25 = int_to_ptr.vmem [resolvable:$true] %s22_s25 }
   0x3   :  { %s349_s26 = scalar_lea.vmem %s23_s25, 128  ;;  %p354_p1 = scmp.lt.s32.totalorder %s23_s25, %s23_s25 }
   0x4   :  { %p350_p0 = scmp.ne.s32.totalorder %s23_s25, %s349_s26  ;;  %p355_p2 = scmp.lt.s32.totalorder %s349_s26, %s349_s26 }
   0x6   :  { %p356_p3 = por %p355_p2, %p354_p1 }
   0x8   :  { %p357_p4 = pnand %p356_p3, %p350_p0 }
   0xa   :  { %360 = shalt.err (!%p357_p4)
}
   0xb   :  { %25 = dma.hbm_to_vmem [thread:$0]  %s461_s1, 128, %s23_s25, [#allocation3]  }
   0xc   :  { %381 = dma.done.wait [#allocation3], 128  }
   0xd   :  { %382 = vsyncadd [#allocation3], 4294967168  ;;  %v386_v0 = vmov 0.0   ;;  %vm387_vm0 = vmmov 0   ;;  %v388_v1 = vmov 0   ;;  %v40_v2 = vld [vmem:[%s460_s0 + $0x8] sm:$0xff] }
   0xe   :  { %317 = vmatprep.subr.mxu0 %v386_v0  ;;  %321 = vmatprep.mubr.msk.f32.mxu0 %vm387_vm0, %v386_v0  ;;  %v39_v3 = vld [vmem:[%s460_s0] sm:$0xff]  ;;  %vm48_vm1 = vcmask 130048   ;;  %vm130_vm2 = vcmask 64512   ;;  %vm216_vm3 = vcmask 1043456   ;;  %vm212_vm4 = vcmask 31744  }
   0xf   :  { %339 = vset.pattern.permute.xlu0 %v388_v1  ;;  %324 = vmatprep.subr.mxu1 %v386_v0  ;;  %v41_v4 = vld [vmem:[#allocation2] sm:$0xff] }
  0x10   :  { %326 = vmatprep.mubr.msk.f32.mxu1 %vm387_vm0, %v386_v0  ;;  %340 = vset.pattern.permute.xlu1 %v388_v1  ;;  %v42_v5 = vld [vmem:[%s462_s2] sm:$0xff] }
  0x11   :  { %318 = vmatpush3.msra.mxu0 %v40_v2  ;;  %45 = vperm.xlu0 %339, %v42_v5   ;;  %v124_v6 = vld [vmem:[%s464_s4] sm:$0xf] }
  0x12   :  { %319 = vmatprep.subr.mxu0 %v386_v0  ;;  %v123_v12 = vld [vmem:[%s463_s3] sm:$0xf]  ;;  %s389_s3 = smov [#allocation5]  }
  0x13   :  { %320 = vmatpush3.msra.mxu0 %v39_v3  ;;  %v206_v13 = vld [vmem:[%s466_s6] sm:$0xf]  ;;  %s297_s16 = sshll.u32 %s389_s3, 4  ;;  %s298_s16 = int_to_ptr.vmem [resolvable:$true] %s297_s16 }
  0x14   :  { %322 = vmatmul.mubr.msk.f32.vlgmr.msra.gmra.mxu0 %vm48_vm1, %v41_v4  ;;  %209 = vperm.xlu1 %340, %v206_v13   ;;  %v205_v19 = vld [vmem:[%s465_s5] sm:$0xf]  ;;  %s361_s6 = scalar_lea.vmem %s298_s16, 64  ;;  %p366_p6 = scmp.lt.s32.totalorder %s298_s16, %s298_s16 }
  0x15   :  { %127 = vperm.xlu0 %339, %v124_v6   ;;  %p362_p5 = scmp.ne.s32.totalorder %s298_s16, %s361_s6  ;;  %p367_p7 = scmp.lt.s32.totalorder %s361_s6, %s361_s6 }
  0x17   :  { %p368_p8 = por %p367_p7, %p366_p6 }
  0x19   :  { %p369_p9 = pnand %p368_p8, %p362_p5 }
  0x8c   :  { %v46_v7 = vpop.permute.xlu0 %45 }
  0x8f   :  { %v210_v20 = vpop.permute.xlu1 %209 }
  0x90   :  { %v128_v14 = vpop.permute.xlu0 %127 }
  0xd4   :  { %v118_v8 = vpop.f32.mrf.mxu0 }
  0xd5   :  { %v119_v9 = vadd.f32 %v118_v8, %v46_v7 }
  0xd6   :  { %v323_v10 = vpop.f32.mrf.mxu0 }
  0xd7   :  { %v122_v11 = vmax.f32 %v119_v9, 0.0 }
  0xd9   :  { %325 = vmatpush3.msra.mxu1 %v122_v11 }
  0xda   :  { %327 = vmatmul.mubr.msk.f32.vlgmr.msra.gmra.mxu1 %vm130_vm2, %v123_v12  ;;  %329 = vmatprep.subr.mxu1 %v386_v0 }
  0xdb   :  { %331 = vmatprep.mubr.msk.f32.mxu1 %vm387_vm0, %v386_v0 }
 0x19a   :  { %v200_v15 = vpop.f32.mrf.mxu1 }
 0x19b   :  { %v201_v16 = vadd.f32 %v200_v15, %v128_v14 }
 0x19c   :  { %v328_v17 = vpop.f32.mrf.mxu1 }
 0x19d   :  { %v204_v18 = vmax.f32 %v201_v16, 0.0 }
 0x19f   :  { %330 = vmatpush3.msk.msra.mxu1 %vm216_vm3, %v204_v18 }
 0x1a0   :  { %332 = vmatmul.mubr.msk.f32.vlgmr.msra.gmra.mxu1 %vm212_vm4, %v205_v19 }
 0x260   :  { %v286_v21 = vpop.f32.mrf.mxu1 }
 0x261   :  { %v287_v22 = vadd.f32 %v286_v21, %v210_v20 }
 0x262   :  { %v333_v23 = vpop.f32.mrf.mxu1 }
 0x263   :  { %290 = vst [vmem:[#allocation5] sm:$0xf] %v287_v22 }
 0x264   :  { %372 = shalt.err (!%p369_p9)
}
 0x265   :  { %300 = dma.vmem_to_hbm [thread:$0]  %s298_s16, 64, %s467_s7, [#allocation4]  }
 0x266   :  { %383 = dma.done.wait [#allocation4], 64  }
 0x267   :  { %384 = vsyncadd [#allocation4], 4294967232 }
 0x268   :  { %304 = vsyncpa [#allocation3], 1 }
 0x269   :  { %305 = vsyncpa [#allocation4], 1 }

</bundles_post_ra>
